<compile_context>
chip_gen: v7x
topology: tpu7x:2x2x1
jax: 0.10.0
libtpu: 0.0.40
codegen_flags: <defaults>
</compile_context>

<pallas_src>
import functools

import numpy as np
import jax
import jax.numpy as jnp
from jax.experimental import pallas as pl
from jax.experimental.pallas import tpu as pltpu


# ----------------------------------------------------------------------------
# Pallas kernel: fused Linear + masked BatchNorm1d (batch stats) + ReLU
# One grid step == `gb` relation spaces.
# ----------------------------------------------------------------------------
def _transition_kernel(counts_ref,                    # scalar prefetch (SMEM), (G_total,)
                       x_ref, wt_ref, prm_ref,        # VMEM blocks
                       o_ref, *, eps: float, gb: int):
    base = pl.program_id(0) * gb

    x = x_ref[...]                       # (Gb, R_PAD, DP)  f32
    wt = wt_ref[...]                     # (Gb, DP, DP)     bf16, pre-transposed W.T
    prm = prm_ref[...]                   # (Gb, 8, DP)      f32; rows 0/1/2 = b/gamma/beta

    # Batched Linear on the MXU: bf16 operands, f32 accumulation.
    z = jnp.einsum("grd,gde->gre", x.astype(jnp.bfloat16), wt,
                   preferred_element_type=jnp.float32)        # (Gb, R_PAD, DP)

    # One (R_PAD, 1) row-index column, shared by every group in this step.
    row_ids = jax.lax.broadcasted_iota(jnp.int32, (x.shape[1], 1), 0)

    for g in range(gb):                                        # static unroll
        n = counts_ref[base + g]                               # valid rows (SMEM scalar)
        zg = z[g] + prm[g, 0:1]                                # + Linear bias (R_PAD, DP)

        # BatchNorm1d training-mode stats over the VALID rows only (biased var,
        # numerically-stable centered form).
        valid = (row_ids < n).astype(jnp.float32)              # (R_PAD, 1), reused twice
        inv_n = 1.0 / jnp.maximum(n, 1).astype(jnp.float32)    # guard n == 0
        mean = jnp.sum(zg * valid, axis=0, keepdims=True) * inv_n
        cent = (zg - mean) * valid
        var = jnp.sum(cent * cent, axis=0, keepdims=True) * inv_n

        # Fold BN into one fused affine; identity when n <= 1
        # (matches `self.norm(z) if z.shape[0] > 1 else z`).
        scale = prm[g, 1:2] * jax.lax.rsqrt(var + eps)
        shift = prm[g, 2:3] - mean * scale
        flag = (n > 1).astype(jnp.float32)
        scale = flag * scale + (1.0 - flag)
        shift = flag * shift

        o_ref[g] = jnp.maximum(zg * scale + shift, 0.0).astype(o_ref.dtype)


@functools.lru_cache(maxsize=None)
def _build_transition_call(n_steps: int, gb: int, r_pad: int, dim_pad: int, eps: float):
    """Builds (and caches) the batched pallas_call for a given shape signature."""
    kernel = functools.partial(_transition_kernel, eps=eps, gb=gb)
    g_total = n_steps * gb

    grid_spec = pltpu.PrefetchScalarGridSpec(
        num_scalar_prefetch=1,                                   # per-group row counts
        grid=(n_steps,),
        in_specs=[
            # padded activation slab: gb spaces per grid step
            pl.BlockSpec((gb, r_pad, dim_pad), lambda s, cnt: (s, 0, 0)),
            # pre-gathered (grid-ordered) bf16 weights: no data-dependent index_map
            pl.BlockSpec((gb, dim_pad, dim_pad), lambda s, cnt: (s, 0, 0)),
            # fused b/gamma/beta block: one DMA per step instead of three
            pl.BlockSpec((gb, 8, dim_pad), lambda s, cnt: (s, 0, 0)),
        ],
        out_specs=pl.BlockSpec((gb, r_pad, dim_pad), lambda s, cnt: (s, 0, 0)),
    )
    cost = pl.CostEstimate(
        flops=2 * g_total * r_pad * dim_pad * dim_pad,
        transcendentals=g_total * dim_pad,                       # rsqrt lanes
        bytes_accessed=g_total * (2 * r_pad * dim_pad * 4        # x + out (f32)
                                  + dim_pad * dim_pad * 2        # weights (bf16)
                                  + 8 * dim_pad * 4),            # fused params
    )
    return pl.pallas_call(
        kernel,
        out_shape=jax.ShapeDtypeStruct((g_total, r_pad, dim_pad), jnp.float32),
        grid_spec=grid_spec,
        compiler_params=pltpu.CompilerParams(
            dimension_semantics=("parallel",)),                  # v7x: shard steps over 2 TCs
        cost_estimate=cost,
    )


# ----------------------------------------------------------------------------
# Parameter construction (deterministic, stacked + padded + cast once at init)
# Stacked row s == space s:  transformH[s//2] if s is even else transformT[s//2]
# ----------------------------------------------------------------------------
def init_transition_layer_params(key, dim: int, rel_num: int):
    dim_pad = max(128, ((dim + 127) // 128) * 128)               # lane-dense feature dim
    n_spaces = 2 * rel_num

    ws, bs = [], []
    for _ in range(n_spaces):
        key, kw, kb = jax.random.split(key, 3)
        ws.append(jax.random.normal(kw, (dim, dim), jnp.float32) * 0.1)
        bs.append(jax.random.normal(kb, (dim,), jnp.float32) * 0.1)

    wt = jnp.transpose(jnp.stack(ws), (0, 2, 1))                 # W.T, pre-transposed ONCE
    wt_pad = jnp.zeros((n_spaces, dim_pad, dim_pad), jnp.float32)
    wt_pad = wt_pad.at[:, :dim, :dim].set(wt).astype(jnp.bfloat16)   # bf16 weights

    # Fused parameter block: row 0 = Linear bias, row 1 = BN gamma, row 2 = BN beta.
    prm = jnp.zeros((n_spaces, 8, dim_pad), jnp.float32)
    prm = prm.at[:, 0, :dim].set(jnp.stack(bs))
    prm = prm.at[:, 1, :dim].set(1.0)
    # row 2 (beta) and all padded feature columns stay zero -> padded cols stay zero.

    return dict(wt=wt_pad, prm=prm, dim=dim, dim_pad=dim_pad, rel_num=rel_num)


# ----------------------------------------------------------------------------
# TransitionLayer.forward — one batched kernel call + host-side routing glue
# ----------------------------------------------------------------------------
def transition_layer_forward(params, rel_spaces, assignR, result, *, eps: float = 1e-5):
    """
    rel_spaces : dict  space -> list of (1, dim) arrays
    assignR    : host-side 2-D integer array/list, assignR[space, i] -> key into `result`
    result     : dict  key -> (1, dim) array   (mutated and returned)
    """
    spaces = [s for s in rel_spaces if len(rel_spaces[s]) > 0]   # drop empty spaces
    if not spaces:
        return result

    dim, dim_pad = params["dim"], params["dim_pad"]
    assignR = np.asarray(assignR)                 # host ints -> routing is free

    counts = [len(rel_spaces[s]) for s in spaces]
    num_groups = len(spaces)
    n_steps = 2 if num_groups >= 2 else 1         # keep >= 2 steps for v7x 2-TC sharding
    gb = -(-num_groups // n_steps)                # spaces per grid step
    g_total = n_steps * gb
    r_pad = max(16, -(-max(counts) // 16) * 16)   # 16-row pad (bf16 sublane packing)

    # One concatenate + one scatter builds the lane-dense (G, R_PAD, DP) slab.
    flat = jnp.concatenate([row for s in spaces for row in rel_spaces[s]], axis=0)
    flat = jnp.pad(flat, ((0, 0), (0, dim_pad - dim)))
    dest = np.asarray([g * r_pad + i
                       for g, s in enumerate(spaces)
                       for i in range(len(rel_spaces[s]))], dtype=np.int32)
    x_pad = jnp.zeros((g_total * r_pad, dim_pad), jnp.float32).at[dest].set(flat)
    x_pad = x_pad.reshape(g_total, r_pad, dim_pad)

    # Pre-gather parameters into grid order (removes the data-dependent index_map).
    sid = np.asarray(spaces + [0] * (g_total - num_groups), np.int32)
    wt_g = jnp.take(params["wt"], sid, axis=0)     # (G_total, DP, DP) bf16
    prm_g = jnp.take(params["prm"], sid, axis=0)   # (G_total, 8, DP)  f32
    cnt = jnp.asarray(counts + [0] * (g_total - num_groups), jnp.int32)

    call = _build_transition_call(n_steps, gb, r_pad, dim_pad, float(eps))
    out = call(cnt, x_pad, wt_g, prm_g)            # (G_total, R_PAD, DP)

    # Route the per-row results back (host-side indices, lazy device slices).
    out_flat = out.reshape(g_total * r_pad, dim_pad)[:, :dim]
    for g, s in enumerate(spaces):
        for i in range(len(rel_spaces[s])):
            result[int(assignR[s, i])] = out_flat[g * r_pad + i: g * r_pad + i + 1]
    return result


# ----------------------------------------------------------------------------
# Pure-JAX reference (correctness sanity check).
# Uses the SAME bf16-rounded weights and bf16-cast activations the kernel
# consumes -- the bf16 rounding is the documented precision trade-off.
# ----------------------------------------------------------------------------
def _ref_block(x, params, space, eps=1e-5):
    dim = params["dim"]
    wt = params["wt"][space, :dim, :dim].astype(jnp.float32)
    b = params["prm"][space, 0, :dim]
    gamma = params["prm"][space, 1, :dim]
    beta = params["prm"][space, 2, :dim]
    xb = x.astype(jnp.bfloat16).astype(jnp.float32)
    z = jnp.dot(xb, wt, precision="highest") + b
    if x.shape[0] > 1:
        mean = jnp.mean(z, axis=0, keepdims=True)
        var = jnp.mean((z - mean) ** 2, axis=0, keepdims=True)
        z = (z - mean) * jax.lax.rsqrt(var + eps) * gamma + beta
    return jnp.maximum(z, 0.0)


if __name__ == "__main__":
    dim = 32
    rel_num = 3

    key = jax.random.PRNGKey(0)
    key, pkey = jax.random.split(key)
    params = init_transition_layer_params(pkey, dim, rel_num)

    # Synthetic rel_spaces: spaces 0..2*rel_num-1, each with 1..3 rows of (1, dim).
    counts = {0: 1, 1: 3, 2: 2, 3: 1, 4: 2, 5: 3}
    rel_spaces = {}
    for space, cnt in counts.items():
        rows = []
        for _ in range(cnt):
            key, xk = jax.random.split(key)
            rows.append(jax.random.normal(xk, (1, dim), jnp.float32))
        rel_spaces[space] = rows

    # assignR stays on the host (plain numpy) -> no device->host syncs during routing.
    max_cnt = max(counts.values())
    assignR = np.zeros((2 * rel_num, max_cnt), np.int32)
    slot = 0
    for space, cnt in counts.items():
        for i in range(cnt):
            assignR[space, i] = slot
            slot += 1

    result = {}
    result = transition_layer_forward(params, rel_spaces, assignR, result)
    for v in result.values():
        jax.block_until_ready(v)

    # Sanity check against the pure-JAX reference.
    ok = True
    for space, rx_list in rel_spaces.items():
        rx = rx_list[0] if len(rx_list) == 1 else jnp.concatenate(rx_list, axis=0)
        ref = _ref_block(rx, params, space)
        for i in range(rx.shape[0]):
            got = result[int(assignR[space, i])]
            if not jnp.allclose(got, ref[i: i + 1], atol=2e-3, rtol=2e-3):
                ok = False

    print("KERNEL_OK" if ok else "MISMATCH")
</pallas_src>

<mosaic_0001>
module attributes {stable_mosaic.version = 11 : i64} {
  func.func @_transition_kernel(%arg0: i32, %arg1: memref<6xi32, #tpu.memory_space<smem>>, %arg2: memref<3x16x128xf32, #tpu.memory_space<vmem>>, %arg3: memref<3x128x128xbf16, #tpu.memory_space<vmem>>, %arg4: memref<3x8x128xf32, #tpu.memory_space<vmem>>, %arg5: memref<3x16x128xf32, #tpu.memory_space<vmem>>) attributes {dimension_semantics = [#tpu.dimension_semantics<parallel>], iteration_bounds = array<i64: 2>, scalar_prefetch = 1 : i64, scratch_operands = 0 : i64, tpu.core_type = #tpu.core_type<tc>, window_params = [{transform_indices = @transform_0, window_bounds = array<i64: 3, 16, 128>}, {transform_indices = @transform_1, window_bounds = array<i64: 3, 128, 128>}, {transform_indices = @transform_2, window_bounds = array<i64: 3, 8, 128>}, {transform_indices = @transform_3, window_bounds = array<i64: 3, 16, 128>}]} {
    %c3_i32 = arith.constant 3 : i32
    %0 = arith.muli %arg0, %c3_i32 : i32
    %c0 = arith.constant 0 : index
    %c0_0 = arith.constant 0 : index
    %c0_1 = arith.constant 0 : index
    %1 = vector.load %arg2[%c0, %c0_0, %c0_1] : memref<3x16x128xf32, #tpu.memory_space<vmem>>, vector<3x16x128xf32>
    %c0_2 = arith.constant 0 : index
    %c0_3 = arith.constant 0 : index
    %c0_4 = arith.constant 0 : index
    %2 = vector.load %arg3[%c0_2, %c0_3, %c0_4] : memref<3x128x128xbf16, #tpu.memory_space<vmem>>, vector<3x128x128xbf16>
    %c0_5 = arith.constant 0 : index
    %c0_6 = arith.constant 0 : index
    %c0_7 = arith.constant 0 : index
    %3 = vector.load %arg4[%c0_5, %c0_6, %c0_7] : memref<3x8x128xf32, #tpu.memory_space<vmem>>, vector<3x8x128xf32>
    %4 = arith.truncf %1 : vector<3x16x128xf32> to vector<3x16x128xbf16>
    "tpu.trace_start"() <{level = 10 : i32, message = "grd,gde->gre"}> : () -> ()
    %cst = arith.constant dense<0.000000e+00> : vector<3x16x128xf32>
    %5 = tpu.matmul %4, %2, %cst {dimension_numbers = #tpu.dot_dimension_numbers<[2], [1], [1], [2], [0, 0, 0, 1, 1, 2], [0], [0]>} : vector<3x16x128xbf16>, vector<3x128x128xbf16>, vector<3x16x128xf32> -> vector<3x16x128xf32>
    "tpu.trace_stop"() : () -> ()
    %6 = tpu.iota {dimensions = array<i32: 0>} : vector<16x1xi32>
    %c0_i32 = arith.constant 0 : i32
    %7 = arith.addi %0, %c0_i32 : i32
    %8 = arith.index_cast %7 : i32 to index
    %9 = memref.load %arg1[%8] : memref<6xi32, #tpu.memory_space<smem>>
    %10 = vector.extract_strided_slice %5 {offsets = [0, 0, 0], sizes = [1, 16, 128], strides = [1, 1, 1]} : vector<3x16x128xf32> to vector<1x16x128xf32>
    %11 = vector.shape_cast %10 : vector<1x16x128xf32> to vector<16x128xf32>
    %12 = vector.extract_strided_slice %3 {offsets = [0, 0, 0], sizes = [1, 1, 128], strides = [1, 1, 1]} : vector<3x8x128xf32> to vector<1x1x128xf32>
    %13 = vector.shape_cast %12 : vector<1x1x128xf32> to vector<1x128xf32>
    %14 = vector.broadcast %13 : vector<1x128xf32> to vector<16x128xf32>
    %15 = arith.addf %11, %14 : vector<16x128xf32>
    %16 = vector.broadcast %9 : i32 to vector<16x1xi32>
    %17 = arith.cmpi slt, %6, %16 : vector<16x1xi32>
    %18 = arith.extui %17 : vector<16x1xi1> to vector<16x1xi32>
    %19 = arith.sitofp %18 : vector<16x1xi32> to vector<16x1xf32>
    %c1_i32 = arith.constant 1 : i32
    %20 = arith.maxsi %9, %c1_i32 : i32
    %21 = arith.sitofp %20 : i32 to f32
    %cst_8 = arith.constant 1.000000e+00 : f32
    %22 = arith.divf %cst_8, %21 : f32
    %23 = vector.broadcast %19 : vector<16x1xf32> to vector<16x128xf32>
    %24 = arith.mulf %15, %23 : vector<16x128xf32>
    %cst_9 = arith.constant dense<0.000000e+00> : vector<128xf32>
    %25 = vector.multi_reduction <add>, %24, %cst_9 [0] : vector<16x128xf32> to vector<128xf32>
    %26 = vector.shape_cast %25 : vector<128xf32> to vector<1x128xf32>
    %27 = vector.broadcast %22 : f32 to vector<1x128xf32>
    %28 = arith.mulf %26, %27 : vector<1x128xf32>
    %29 = vector.broadcast %28 : vector<1x128xf32> to vector<16x128xf32>
    %30 = arith.subf %15, %29 : vector<16x128xf32>
    %31 = vector.broadcast %19 : vector<16x1xf32> to vector<16x128xf32>
    %32 = arith.mulf %30, %31 : vector<16x128xf32>
    %33 = arith.mulf %32, %32 : vector<16x128xf32>
    %cst_10 = arith.constant dense<0.000000e+00> : vector<128xf32>
    %34 = vector.multi_reduction <add>, %33, %cst_10 [0] : vector<16x128xf32> to vector<128xf32>
    %35 = vector.shape_cast %34 : vector<128xf32> to vector<1x128xf32>
    %36 = vector.broadcast %22 : f32 to vector<1x128xf32>
    %37 = arith.mulf %35, %36 : vector<1x128xf32>
    %38 = vector.extract_strided_slice %3 {offsets = [0, 1, 0], sizes = [1, 1, 128], strides = [1, 1, 1]} : vector<3x8x128xf32> to vector<1x1x128xf32>
    %39 = vector.shape_cast %38 : vector<1x1x128xf32> to vector<1x128xf32>
    %cst_11 = arith.constant 9.99999974E-6 : f32
    %40 = vector.broadcast %cst_11 : f32 to vector<1x128xf32>
    %41 = arith.addf %37, %40 : vector<1x128xf32>
    %42 = math.rsqrt %41 : vector<1x128xf32>
    %43 = arith.mulf %39, %42 : vector<1x128xf32>
    %44 = vector.extract_strided_slice %3 {offsets = [0, 2, 0], sizes = [1, 1, 128], strides = [1, 1, 1]} : vector<3x8x128xf32> to vector<1x1x128xf32>
    %45 = vector.shape_cast %44 : vector<1x1x128xf32> to vector<1x128xf32>
    %46 = arith.mulf %28, %43 : vector<1x128xf32>
    %47 = arith.subf %45, %46 : vector<1x128xf32>
    %c1_i32_12 = arith.constant 1 : i32
    %48 = arith.cmpi sgt, %9, %c1_i32_12 : i32
    %49 = arith.extui %48 : i1 to i32
    %50 = arith.sitofp %49 : i32 to f32
    %51 = vector.broadcast %50 : f32 to vector<1x128xf32>
    %52 = arith.mulf %51, %43 : vector<1x128xf32>
    %cst_13 = arith.constant 1.000000e+00 : f32
    %53 = arith.subf %cst_13, %50 : f32
    %54 = vector.broadcast %53 : f32 to vector<1x128xf32>
    %55 = arith.addf %52, %54 : vector<1x128xf32>
    %56 = vector.broadcast %50 : f32 to vector<1x128xf32>
    %57 = arith.mulf %56, %47 : vector<1x128xf32>
    %58 = vector.broadcast %55 : vector<1x128xf32> to vector<16x128xf32>
    %59 = arith.mulf %15, %58 : vector<16x128xf32>
    %60 = vector.broadcast %57 : vector<1x128xf32> to vector<16x128xf32>
    %61 = arith.addf %59, %60 : vector<16x128xf32>
    %cst_14 = arith.constant 0.000000e+00 : f32
    %62 = vector.broadcast %cst_14 : f32 to vector<16x128xf32>
    %63 = arith.maximumf %61, %62 : vector<16x128xf32>
    %c0_15 = arith.constant 0 : index
    %c0_16 = arith.constant 0 : index
    %c0_17 = arith.constant 0 : index
    %64 = vector.load %arg5[%c0_15, %c0_16, %c0_17] : memref<3x16x128xf32, #tpu.memory_space<vmem>>, vector<1x16x128xf32>
    %65 = vector.shape_cast %64 : vector<1x16x128xf32> to vector<16x128xf32>
    %66 = vector.shape_cast %63 : vector<16x128xf32> to vector<1x16x128xf32>
    tpu.vector_store %arg5[%c0_15, %c0_16, %c0_17], %66 {strides = array<i32>} : memref<3x16x128xf32, #tpu.memory_space<vmem>>, vector<1x16x128xf32>,
    %c1_i32_18 = arith.constant 1 : i32
    %67 = arith.addi %0, %c1_i32_18 : i32
    %68 = arith.index_cast %67 : i32 to index
    %69 = memref.load %arg1[%68] : memref<6xi32, #tpu.memory_space<smem>>
    %70 = vector.extract_strided_slice %5 {offsets = [1, 0, 0], sizes = [1, 16, 128], strides = [1, 1, 1]} : vector<3x16x128xf32> to vector<1x16x128xf32>
    %71 = vector.shape_cast %70 : vector<1x16x128xf32> to vector<16x128xf32>
    %72 = vector.extract_strided_slice %3 {offsets = [1, 0, 0], sizes = [1, 1, 128], strides = [1, 1, 1]} : vector<3x8x128xf32> to vector<1x1x128xf32>
    %73 = vector.shape_cast %72 : vector<1x1x128xf32> to vector<1x128xf32>
    %74 = vector.broadcast %73 : vector<1x128xf32> to vector<16x128xf32>
    %75 = arith.addf %71, %74 : vector<16x128xf32>
    %76 = vector.broadcast %69 : i32 to vector<16x1xi32>
    %77 = arith.cmpi slt, %6, %76 : vector<16x1xi32>
    %78 = arith.extui %77 : vector<16x1xi1> to vector<16x1xi32>
    %79 = arith.sitofp %78 : vector<16x1xi32> to vector<16x1xf32>
    %c1_i32_19 = arith.constant 1 : i32
    %80 = arith.maxsi %69, %c1_i32_19 : i32
    %81 = arith.sitofp %80 : i32 to f32
    %cst_20 = arith.constant 1.000000e+00 : f32
    %82 = arith.divf %cst_20, %81 : f32
    %83 = vector.broadcast %79 : vector<16x1xf32> to vector<16x128xf32>
    %84 = arith.mulf %75, %83 : vector<16x128xf32>
    %cst_21 = arith.constant dense<0.000000e+00> : vector<128xf32>
    %85 = vector.multi_reduction <add>, %84, %cst_21 [0] : vector<16x128xf32> to vector<128xf32>
    %86 = vector.shape_cast %85 : vector<128xf32> to vector<1x128xf32>
    %87 = vector.broadcast %82 : f32 to vector<1x128xf32>
    %88 = arith.mulf %86, %87 : vector<1x128xf32>
    %89 = vector.broadcast %88 : vector<1x128xf32> to vector<16x128xf32>
    %90 = arith.subf %75, %89 : vector<16x128xf32>
    %91 = vector.broadcast %79 : vector<16x1xf32> to vector<16x128xf32>
    %92 = arith.mulf %90, %91 : vector<16x128xf32>
    %93 = arith.mulf %92, %92 : vector<16x128xf32>
    %cst_22 = arith.constant dense<0.000000e+00> : vector<128xf32>
    %94 = vector.multi_reduction <add>, %93, %cst_22 [0] : vector<16x128xf32> to vector<128xf32>
    %95 = vector.shape_cast %94 : vector<128xf32> to vector<1x128xf32>
    %96 = vector.broadcast %82 : f32 to vector<1x128xf32>
    %97 = arith.mulf %95, %96 : vector<1x128xf32>
    %98 = vector.extract_strided_slice %3 {offsets = [1, 1, 0], sizes = [1, 1, 128], strides = [1, 1, 1]} : vector<3x8x128xf32> to vector<1x1x128xf32>
    %99 = vector.shape_cast %98 : vector<1x1x128xf32> to vector<1x128xf32>
    %cst_23 = arith.constant 9.99999974E-6 : f32
    %100 = vector.broadcast %cst_23 : f32 to vector<1x128xf32>
    %101 = arith.addf %97, %100 : vector<1x128xf32>
    %102 = math.rsqrt %101 : vector<1x128xf32>
    %103 = arith.mulf %99, %102 : vector<1x128xf32>
    %104 = vector.extract_strided_slice %3 {offsets = [1, 2, 0], sizes = [1, 1, 128], strides = [1, 1, 1]} : vector<3x8x128xf32> to vector<1x1x128xf32>
    %105 = vector.shape_cast %104 : vector<1x1x128xf32> to vector<1x128xf32>
    %106 = arith.mulf %88, %103 : vector<1x128xf32>
    %107 = arith.subf %105, %106 : vector<1x128xf32>
    %c1_i32_24 = arith.constant 1 : i32
    %108 = arith.cmpi sgt, %69, %c1_i32_24 : i32
    %109 = arith.extui %108 : i1 to i32
    %110 = arith.sitofp %109 : i32 to f32
    %111 = vector.broadcast %110 : f32 to vector<1x128xf32>
    %112 = arith.mulf %111, %103 : vector<1x128xf32>
    %cst_25 = arith.constant 1.000000e+00 : f32
    %113 = arith.subf %cst_25, %110 : f32
    %114 = vector.broadcast %113 : f32 to vector<1x128xf32>
    %115 = arith.addf %112, %114 : vector<1x128xf32>
    %116 = vector.broadcast %110 : f32 to vector<1x128xf32>
    %117 = arith.mulf %116, %107 : vector<1x128xf32>
    %118 = vector.broadcast %115 : vector<1x128xf32> to vector<16x128xf32>
    %119 = arith.mulf %75, %118 : vector<16x128xf32>
    %120 = vector.broadcast %117 : vector<1x128xf32> to vector<16x128xf32>
    %121 = arith.addf %119, %120 : vector<16x128xf32>
    %cst_26 = arith.constant 0.000000e+00 : f32
    %122 = vector.broadcast %cst_26 : f32 to vector<16x128xf32>
    %123 = arith.maximumf %121, %122 : vector<16x128xf32>
    %c1 = arith.constant 1 : index
    %c0_27 = arith.constant 0 : index
    %c0_28 = arith.constant 0 : index
    %124 = vector.load %arg5[%c1, %c0_27, %c0_28] : memref<3x16x128xf32, #tpu.memory_space<vmem>>, vector<1x16x128xf32>
    %125 = vector.shape_cast %124 : vector<1x16x128xf32> to vector<16x128xf32>
    %126 = vector.shape_cast %123 : vector<16x128xf32> to vector<1x16x128xf32>
    tpu.vector_store %arg5[%c1, %c0_27, %c0_28], %126 {strides = array<i32>} : memref<3x16x128xf32, #tpu.memory_space<vmem>>, vector<1x16x128xf32>,
    %c2_i32 = arith.constant 2 : i32
    %127 = arith.addi %0, %c2_i32 : i32
    %128 = arith.index_cast %127 : i32 to index
    %129 = memref.load %arg1[%128] : memref<6xi32, #tpu.memory_space<smem>>
    %130 = vector.extract_strided_slice %5 {offsets = [2, 0, 0], sizes = [1, 16, 128], strides = [1, 1, 1]} : vector<3x16x128xf32> to vector<1x16x128xf32>
    %131 = vector.shape_cast %130 : vector<1x16x128xf32> to vector<16x128xf32>
    %132 = vector.extract_strided_slice %3 {offsets = [2, 0, 0], sizes = [1, 1, 128], strides = [1, 1, 1]} : vector<3x8x128xf32> to vector<1x1x128xf32>
    %133 = vector.shape_cast %132 : vector<1x1x128xf32> to vector<1x128xf32>
    %134 = vector.broadcast %133 : vector<1x128xf32> to vector<16x128xf32>
    %135 = arith.addf %131, %134 : vector<16x128xf32>
    %136 = vector.broadcast %129 : i32 to vector<16x1xi32>
    %137 = arith.cmpi slt, %6, %136 : vector<16x1xi32>
    %138 = arith.extui %137 : vector<16x1xi1> to vector<16x1xi32>
    %139 = arith.sitofp %138 : vector<16x1xi32> to vector<16x1xf32>
    %c1_i32_29 = arith.constant 1 : i32
    %140 = arith.maxsi %129, %c1_i32_29 : i32
    %141 = arith.sitofp %140 : i32 to f32
    %cst_30 = arith.constant 1.000000e+00 : f32
    %142 = arith.divf %cst_30, %141 : f32
    %143 = vector.broadcast %139 : vector<16x1xf32> to vector<16x128xf32>
    %144 = arith.mulf %135, %143 : vector<16x128xf32>
    %cst_31 = arith.constant dense<0.000000e+00> : vector<128xf32>
    %145 = vector.multi_reduction <add>, %144, %cst_31 [0] : vector<16x128xf32> to vector<128xf32>
    %146 = vector.shape_cast %145 : vector<128xf32> to vector<1x128xf32>
    %147 = vector.broadcast %142 : f32 to vector<1x128xf32>
    %148 = arith.mulf %146, %147 : vector<1x128xf32>
    %149 = vector.broadcast %148 : vector<1x128xf32> to vector<16x128xf32>
    %150 = arith.subf %135, %149 : vector<16x128xf32>
    %151 = vector.broadcast %139 : vector<16x1xf32> to vector<16x128xf32>
    %152 = arith.mulf %150, %151 : vector<16x128xf32>
    %153 = arith.mulf %152, %152 : vector<16x128xf32>
    %cst_32 = arith.constant dense<0.000000e+00> : vector<128xf32>
    %154 = vector.multi_reduction <add>, %153, %cst_32 [0] : vector<16x128xf32> to vector<128xf32>
    %155 = vector.shape_cast %154 : vector<128xf32> to vector<1x128xf32>
    %156 = vector.broadcast %142 : f32 to vector<1x128xf32>
    %157 = arith.mulf %155, %156 : vector<1x128xf32>
    %158 = vector.extract_strided_slice %3 {offsets = [2, 1, 0], sizes = [1, 1, 128], strides = [1, 1, 1]} : vector<3x8x128xf32> to vector<1x1x128xf32>
    %159 = vector.shape_cast %158 : vector<1x1x128xf32> to vector<1x128xf32>
    %cst_33 = arith.constant 9.99999974E-6 : f32
    %160 = vector.broadcast %cst_33 : f32 to vector<1x128xf32>
    %161 = arith.addf %157, %160 : vector<1x128xf32>
    %162 = math.rsqrt %161 : vector<1x128xf32>
    %163 = arith.mulf %159, %162 : vector<1x128xf32>
    %164 = vector.extract_strided_slice %3 {offsets = [2, 2, 0], sizes = [1, 1, 128], strides = [1, 1, 1]} : vector<3x8x128xf32> to vector<1x1x128xf32>
    %165 = vector.shape_cast %164 : vector<1x1x128xf32> to vector<1x128xf32>
    %166 = arith.mulf %148, %163 : vector<1x128xf32>
    %167 = arith.subf %165, %166 : vector<1x128xf32>
    %c1_i32_34 = arith.constant 1 : i32
    %168 = arith.cmpi sgt, %129, %c1_i32_34 : i32
    %169 = arith.extui %168 : i1 to i32
    %170 = arith.sitofp %169 : i32 to f32
    %171 = vector.broadcast %170 : f32 to vector<1x128xf32>
    %172 = arith.mulf %171, %163 : vector<1x128xf32>
    %cst_35 = arith.constant 1.000000e+00 : f32
    %173 = arith.subf %cst_35, %170 : f32
    %174 = vector.broadcast %173 : f32 to vector<1x128xf32>
    %175 = arith.addf %172, %174 : vector<1x128xf32>
    %176 = vector.broadcast %170 : f32 to vector<1x128xf32>
    %177 = arith.mulf %176, %167 : vector<1x128xf32>
    %178 = vector.broadcast %175 : vector<1x128xf32> to vector<16x128xf32>
    %179 = arith.mulf %135, %178 : vector<16x128xf32>
    %180 = vector.broadcast %177 : vector<1x128xf32> to vector<16x128xf32>
    %181 = arith.addf %179, %180 : vector<16x128xf32>
    %cst_36 = arith.constant 0.000000e+00 : f32
    %182 = vector.broadcast %cst_36 : f32 to vector<16x128xf32>
    %183 = arith.maximumf %181, %182 : vector<16x128xf32>
    %c2 = arith.constant 2 : index
    %c0_37 = arith.constant 0 : index
    %c0_38 = arith.constant 0 : index
    %184 = vector.load %arg5[%c2, %c0_37, %c0_38] : memref<3x16x128xf32, #tpu.memory_space<vmem>>, vector<1x16x128xf32>
    %185 = vector.shape_cast %184 : vector<1x16x128xf32> to vector<16x128xf32>
    %186 = vector.shape_cast %183 : vector<16x128xf32> to vector<1x16x128xf32>
    tpu.vector_store %arg5[%c2, %c0_37, %c0_38], %186 {strides = array<i32>} : memref<3x16x128xf32, #tpu.memory_space<vmem>>, vector<1x16x128xf32>,
    return
  }
  func.func @transform_0(%arg0: i32, %arg1: memref<6xi32, #tpu.memory_space<smem>>) -> (i32, i32, i32) {
    %c0_i32 = arith.constant 0 : i32
    %c0_i32_0 = arith.constant 0 : i32
    %c0_i32_1 = arith.constant 0 : i32
    return %arg0, %c0_i32, %c0_i32_0 : i32, i32, i32
  }
  func.func @transform_1(%arg0: i32, %arg1: memref<6xi32, #tpu.memory_space<smem>>) -> (i32, i32, i32) {
    %c0_i32 = arith.constant 0 : i32
    %c0_i32_0 = arith.constant 0 : i32
    %c0_i32_1 = arith.constant 0 : i32
    return %arg0, %c0_i32, %c0_i32_0 : i32, i32, i32
  }
  func.func @transform_2(%arg0: i32, %arg1: memref<6xi32, #tpu.memory_space<smem>>) -> (i32, i32, i32) {
    %c0_i32 = arith.constant 0 : i32
    %c0_i32_0 = arith.constant 0 : i32
    %c0_i32_1 = arith.constant 0 : i32
    return %arg0, %c0_i32, %c0_i32_0 : i32, i32, i32
  }
  func.func @transform_3(%arg0: i32, %arg1: memref<6xi32, #tpu.memory_space<smem>>) -> (i32, i32, i32) {
    %c0_i32 = arith.constant 0 : i32
    %c0_i32_0 = arith.constant 0 : i32
    %c0_i32_1 = arith.constant 0 : i32
    return %arg0, %c0_i32, %c0_i32_0 : i32, i32, i32
  }
}

</mosaic_0001>

<bundles_post_ra>
// kernel: tpu_custom_call.1
= control target key start
LH: loop header
LB: loop body
LE: loop exit
PB: predicated region body
PF: predicated region fallthrough
CT: control target
= control target key end

     0   :  { %s1921_s0 = inlined_call_operand.hbm [shape: s32[6], index: 0, kind: input, shape index: {}]   ;;  %s1922_s1 = inlined_call_operand.hbm [shape: f32[6,16,128], index: 1, kind: input, shape index: {}]   ;;  %s1923_s2 = inlined_call_operand.hbm [shape: bf16[6,128,128], index: 2, kind: input, shape index: {}]   ;;  %s1924_s3 = inlined_call_operand.hbm [shape: f32[6,8,128], index: 3, kind: input, shape index: {}]   ;;  %s1925_s4 = inlined_call_operand.hbm [shape: f32[6,16,128], index: 4, kind: output, shape index: {}]  }
   0x1   :  { %1928 = sst [smem:[#allocation15_spill]] %s1922_s1  ;;  %s1235_s17 = scalar_lea.hbm %s1921_s0, 16 }
   0x2   :  { %p1236_p0 = scmp.ne.s32.totalorder %s1921_s0, %s1235_s17  ;;  %p1239_p1 = scmp.lt.u32.totalorder %s1235_s17, %s1921_s0 }
   0x4   :  { %p1241_p2 = pnand %p1239_p1, %p1236_p0 }
   0x6   :  { %1244 = shalt.err (!%p1241_p2)  }
   0x7   :  { %s1409_s22 = smov [#allocation3]  }
   0x8   :  { %10 = dma.hbm_to_smem %s1921_s0, 16, %s1409_s22, [#allocation2] }
   0x9   :  { %1379 = dma.done.wait [#allocation2], 16 }
   0xa   :  { %1380 = vsyncadd [#allocation2], 4294967280 }
   0xb   :  { %12 = sfence }
   0xc   :  { %13 = vsyncpa [#allocation5], 0 }
   0xd   :  { %15 = vsyncpa [#allocation5 + $0x1], 0 }
   0xe   :  { %16 = vsyncpa [#allocation8], 0 }
   0xf   :  { %18 = vsyncpa [#allocation8 + $0x1], 0 }
  0x10   :  { %19 = vsyncpa [#allocation6], 0 }
  0x11   :  { %21 = vsyncpa [#allocation6 + $0x1], 0  ;;  %s1459_s25 = smov 0   ;;  %s1461_s26 = smov 0  }
  0x12   :  { %s1463_s27 = smov 0   ;;  %s1465_s28 = smov 0  }
  0x13 LB: > { %s1480_s0 = sadd.s32 4294967295, %s1407_s28   ;;  %s978_s29 = sadd.s32 4294967294, %s1407_s28   ;;  %s1407_s28 = sphi %s1465_s28, %s1945_s28   ;;  %s1403_s27 = sphi %s1463_s27, %s1944_s27   ;;  %s1399_s26 = sphi %s1461_s26, %s1943_s26   ;;  %s1395_s25 = sphi %s1459_s25, %s1942_s25  }
  0x14   : > { %s1484_s30 = sadd.s32 1, %s1407_s28   ;;  %s34_s5 = sadd.s32 1, %s1403_s27 }
  0x15   : > { %s31_s6 = ssub.s32 %s1407_s28, %s1484_s30  ;;  %p41_p3 = scmp.ne.s32.totalorder %s1403_s27, %s1399_s26 }
  0x16   : > { %p32_p4 = scmp.eq.s32.totalorder %s31_s6, 0  ;;  %p42_p5 = scmp.eq.s32.totalorder %s1407_s28, 0 }
  0x17   : > { %p47_p6 = scmp.ne.s32.totalorder %s1399_s26, %s1395_s25  ;;  %p48_p7 = scmp.eq.s32.totalorder %s1480_s0, 0 }
  0x18   : > { %s1496_s7 = scalar_select %p32_p4, %s1403_s27, %s34_s5  }
  0x19   : > { %p43_p8 = por %p42_p5, %p41_p3  ;;  %p1498_p9 = por %p48_p7, %p47_p6 }
  0x1a   : > { %p123_p10 = scmp.eq.s32.totalorder %s1480_s0, 1  ;;  %p129_p11 = scmp.eq.s32.totalorder %s978_s29, 1 }
  0x1b   : > { %s1929_s8 = scalar_select %p1498_p9, 1, 0 }
  0x1c   : > { %p1156_p13 = scmp.lt.s32.totalorder %s1407_s28, 2  ;;  %p1505_p0 = por %p123_p10, %p41_p3 }
  0x1d   : > { %p1509_p1 = por %p129_p11, %p47_p6  ;;  %s1514_s11 = sand.u32 1, %s1403_s27  }
  0x1e   : > { %s1930_s9 = scalar_select %p1505_p0, 1, 0 }
  0x1f   : > { %s1931_s10 = scalar_select %p1509_p1, 1, 0 }
  0x20   : > { %p1516_p2 = pnand %p1156_p13, %p43_p8  ;;  %s171_s13 = sand.u32 1, %s1407_s28  }
  0x21   : > { %s1123_s14 = smul.u32 192, %s1514_s11  ;;  %s1531_s21 = scalar_lea.sflag [#allocation8], %s171_s13 }
  0x22   : > { %s1033_s15 = smul.u32 3072, %s1407_s28  ;;  %p1537_p5 = pneg %p1516_p2 }
  0x23   : > { %s175_s16 = scalar_lea.vmem [#allocation7], %s1123_s14  ;;  %s1250_s5 = scalar_lea.hbm %s1923_s2, 6144 }
  0x24   : > { %s183_s17 = sshll.u32 %s175_s16, 4  ;;  %s1526_s20 = scalar_lea.hbm %s1923_s2, %s1033_s15  ;;  %s1528_s17 = int_to_ptr.vmem [resolvable:$true] %s183_s17 }
  0x25   : > { %s1245_s22 = scalar_lea.hbm %s1526_s20, 3072  ;;  %p1251_p8 = scmp.lt.u32.totalorder %s1526_s20, %s1923_s2 }
  0x26   : > { %p1246_p4 = scmp.ne.s32.totalorder %s1526_s20, %s1245_s22  ;;  %p1252_p10 = scmp.lt.u32.totalorder %s1250_s5, %s1245_s22 }
  0x27   : > { %p1254_p13 = scmp.lt.u32.totalorder %s1245_s22, %s1526_s20 }
  0x28   : > { %p1248_p6 = pnand %p1537_p5, %p1246_p4  ;;  %p1253_p11 = por %p1252_p10, %p1251_p8 }
  0x2a   : > { %p1249_p7 = pneg %p1248_p6  ;;  %p1255_p12 = por %p1254_p13, %p1253_p11 }
  0x2c   : > { %p1256_p3 = pnand %p1255_p12, %p1249_p7 }
  0x2e   : > { %1259 = shalt.err (!%p1256_p3)
}
  0x2f   : > { %s1260_s13 = scalar_lea.vmem %s1528_s17, 3072  ;;  %s1410_s15 = smov [#allocation7]  }
  0x30   : > { %p1261_p4 = scmp.ne.s32.totalorder %s1528_s17, %s1260_s13  ;;  %s1265_s16 = sshll.u32 %s1410_s15, 4  ;;  %s1266_s16 = int_to_ptr.vmem [resolvable:$false] %s1265_s16 }
  0x31   : > { %s1267_s18 = scalar_lea.vmem %s1266_s16, 6144  ;;  %p1268_p0 = scmp.lt.s32.totalorder %s1528_s17, %s1266_s16 }
  0x32   : > { %p1263_p6 = pnand %p1261_p4, %p1537_p5  ;;  %p1269_p9 = scmp.lt.s32.totalorder %s1267_s18, %s1260_s13 }
  0x34   : > { %p1264_p1 = pneg %p1263_p6  ;;  %p1270_p8 = por %p1269_p9, %p1268_p0 }
  0x36   : > { %p1271_p10 = pnand %p1270_p8, %p1264_p1 }
  0x38   : > { %1274 = shalt.err (!%p1271_p10)
}
  0x39   : > { %s1411_s19 = smov 64   ;;  %s1412_s22 = smov 4  }
  0x3a   : > { %1148 = dma.hbm_to_vmem [thread:$0]  (!%p1516_p2), %s1526_s20, 3072, %s1528_s17, %s1531_s21, %s1411_s19, %s1411_s19, %s1412_s22  }
  0x3b   : > { %p212_p12 = scmp.lt.s32.totalorder %s1407_s28, 3  ;;  %s1122_s24 = smul.u32 48, %s1514_s11 }
  0x3c   : > { %p1934_p9 = scmp.ge.s32.totalorder %s1407_s28, 1  ;;  %s1032_s5 = smul.u32 768, %s1407_s28 }
  0x3d   : > { %s1936_s1 = sld [smem:[#allocation15_spill]]  ;;  %s153_s15 = scalar_lea.vmem [#allocation4], %s1122_s24 }
  0x3e   : > { %p1565_p0 = pnand %p1934_p9, %p212_p12  ;;  %s161_s16 = sshll.u32 %s153_s15, 4  ;;  %s1575_s16 = int_to_ptr.vmem [resolvable:$true] %s161_s16 }
  0x3f   : > { %s1124_s17 = smul.u32 24, %s1514_s11  ;;  %s150_s20 = scalar_lea.sflag [#allocation5], %s1514_s11 }
  0x40   : > { %s1935_s29 = scalar_select %p1565_p0, 1, 0 }
  0x43   : > { %s1573_s13 = scalar_lea.hbm %s1936_s1, %s1032_s5  ;;  %s1280_s5 = scalar_lea.hbm %s1936_s1, 1536 }
  0x44   : > { %s1275_s18 = scalar_lea.hbm %s1573_s13, 768  ;;  %p1281_p11 = scmp.lt.u32.totalorder %s1573_s13, %s1936_s1 }
  0x45   : > { %p1276_p1 = scmp.ne.s32.totalorder %s1573_s13, %s1275_s18  ;;  %p1282_p13 = scmp.lt.u32.totalorder %s1280_s5, %s1275_s18 }
  0x46   : > { %p1284_p6 = scmp.lt.u32.totalorder %s1275_s18, %s1573_s13 }
  0x47   : > { %p1278_p3 = pnand %p1276_p1, %p1537_p5  ;;  %p1283_p4 = por %p1282_p13, %p1281_p11 }
  0x49   : > { %p1279_p7 = pneg %p1278_p3  ;;  %p1285_p8 = por %p1284_p6, %p1283_p4 }
  0x4b   : > { %p1286_p10 = pnand %p1285_p8, %p1279_p7 }
  0x4d   : > { %1289 = shalt.err (!%p1286_p10)
}
  0x4e   : > { %s1290_s24 = scalar_lea.vmem %s1575_s16, 768  ;;  %s1413_s15 = smov [#allocation4]  }
  0x4f   : > { %p1291_p12 = scmp.ne.s32.totalorder %s1575_s16, %s1290_s24  ;;  %s1295_s19 = sshll.u32 %s1413_s15, 4  ;;  %s1296_s19 = int_to_ptr.vmem [resolvable:$false] %s1295_s19 }
  0x50   : > { %s1297_s22 = scalar_lea.vmem %s1296_s19, 1536  ;;  %p1298_p3 = scmp.lt.s32.totalorder %s1575_s16, %s1296_s19 }
  0x51   : > { %p1293_p9 = pnand %p1291_p12, %p1537_p5  ;;  %p1299_p0 = scmp.lt.s32.totalorder %s1297_s22, %s1290_s24 }
  0x53   : > { %p1294_p1 = pneg %p1293_p9  ;;  %p1300_p11 = por %p1299_p0, %p1298_p3 }
  0x55   : > { %p1301_p13 = pnand %p1300_p11, %p1294_p1 }
  0x57   : > { %1304 = shalt.err (!%p1301_p13)
}
  0x58   : > { %s1414_s18 = smov 128   ;;  %s1415_s5 = smov 8  }
  0x59   : > { %1145 = dma.hbm_to_vmem [thread:$0]  (!%p1516_p2), %s1573_s13, 768, %s1575_s16, %s150_s20, %s1414_s18, %s1414_s18, %s1415_s5  }
  0x5a   : > { %s1029_s6 = smul.u32 384, %s1407_s28  ;;  %s197_s14 = scalar_lea.vmem [#allocation9], %s1124_s17 }
  0x5b   : > { %s204_s24 = sshll.u32 %s197_s14, 4  ;;  %s1310_s16 = scalar_lea.hbm %s1924_s3, 768  ;;  %s1613_s24 = int_to_ptr.vmem [resolvable:$true] %s204_s24 }
  0x5c   : > { %s1611_s22 = scalar_lea.hbm %s1924_s3, %s1029_s6 }
  0x5d   : > { %s1305_s1 = scalar_lea.hbm %s1611_s22, 384  ;;  %p1311_p6 = scmp.lt.u32.totalorder %s1611_s22, %s1924_s3 }
  0x5e   : > { %p1306_p0 = scmp.ne.s32.totalorder %s1611_s22, %s1305_s1  ;;  %p1312_p8 = scmp.lt.u32.totalorder %s1310_s16, %s1305_s1 }
  0x5f   : > { %p1314_p12 = scmp.lt.u32.totalorder %s1305_s1, %s1611_s22 }
  0x60   : > { %p1308_p7 = pnand %p1306_p0, %p1537_p5  ;;  %p1313_p10 = por %p1312_p8, %p1311_p6 }
  0x62   : > { %p1309_p4 = pneg %p1308_p7  ;;  %p1315_p9 = por %p1314_p12, %p1313_p10 }
  0x64   : > { %p1316_p1 = pnand %p1315_p9, %p1309_p4 }
  0x66   : > { %1319 = shalt.err (!%p1316_p1)
}
  0x67   : > { %s1320_s6 = scalar_lea.vmem %s1613_s24, 384  ;;  %s1416_s14 = smov [#allocation9]  }
  0x68   : > { %p1321_p3 = scmp.ne.s32.totalorder %s1613_s24, %s1320_s6  ;;  %s1325_s15 = sshll.u32 %s1416_s14, 4  ;;  %s1326_s15 = int_to_ptr.vmem [resolvable:$false] %s1325_s15 }
  0x69   : > { %s1327_s19 = scalar_lea.vmem %s1326_s15, 768  ;;  %p1328_p0 = scmp.lt.s32.totalorder %s1613_s24, %s1326_s15 }
  0x6a   : > { %p1323_p11 = pnand %p1321_p3, %p1537_p5  ;;  %p1329_p7 = scmp.lt.s32.totalorder %s1327_s19, %s1320_s6 }
  0x6c   : > { %p1324_p13 = pneg %p1323_p11  ;;  %p1330_p6 = por %p1329_p7, %p1328_p0 }
  0x6e   : > { %p1331_p8 = pnand %p1330_p6, %p1324_p13 }
  0x70   : > { %1334 = shalt.err (!%p1331_p8)
}
  0x71   : > { %1151 = dma.hbm_to_vmem [thread:$0]  (!%p1516_p2), %s1611_s22, 384, %s1613_s24, %s1531_s21, %s1414_s18, %s1414_s18, %s1415_s5  }
  0x72   : > { %p1937_p5 = scmp.ne.s32.totalorder %s1935_s29, 0 }
  0x73   : > { %s1643_s1 = sand.u32 (!%p1937_p5), 1, %s1399_s26   ;;  %p1938_p4 = scmp.ne.s32.totalorder (!%p1937_p5), %s1929_s8, 0 }
  0x74   : > { %216 = sbr.rel (%p1937_p5) target bundleno = 494 (0x1ee), region = 32  ;;  %s219_s13 = scalar_lea.sflag (!%p1937_p5), [#allocation5], %s1643_s1 }
  0x75   : > { %s1125_s23 = smul.u32 (!%p1937_p5), 48, %s1643_s1 }
  0x77   : > { %s1649_s12 = scalar_lea.vmem (!%p1937_p5), [#allocation4], %s1125_s23 }
  0x7b   : > { %1382 = dma.done.wait (%p1938_p4), %s219_s13, 768  }
  0x7c   : > { %1384 = vsyncadd (%p1938_p4), %s219_s13, 4294966528  ;;  %s227_s21 = sand.u32 1, %s1480_s0   ;;  %s1126_s29 = smul.u32 192, %s1643_s1 }
  0x7d   : > { %s228_s18 = scalar_lea.sflag [#allocation8], %s227_s21 }
  0x7e   : > { %s1657_s5 = scalar_lea.vmem [#allocation7], %s1126_s29 }
  0x7f   : > { %1386 = dma.done.wait (%p1938_p4), %s228_s18, 3456  }
  0x80   : > { %1388 = vsyncadd (%p1938_p4), %s228_s18, 4294963840  ;;  %s1664_s24 = smul.u32 3, %s1480_s0  ;;  %v1417_v0 = vmov 0.0   ;;  %vm1418_vm0 = vmmov 0   ;;  %v1199_v1 = vld [vmem:[%s1657_s5] sm:$0xff]   ;;  %v1201_v3 = vld [vmem:[%s1657_s5 + $0x8] sm:$0xff]   ;;  %v606_v40 = vlaneseq }
  0x81   : > { %1062 = vmatprep.subr.bf16.mxu0 %v1417_v0  ;;  %1082 = vmatprep.subr.bf16.mxu1 %v1417_v0  ;;  %v1200_v2 = vld [vmem:[%s1657_s5 + $0x40] sm:$0xff]   ;;  %v1202_v4 = vld [vmem:[%s1657_s5 + $0x48] sm:$0xff]   ;;  %v1203_v5 = vld [vmem:[%s1657_s5 + $0x10] sm:$0xff]   ;;  %p1939_p1 = scmp.ne.s32.totalorder %s1930_s9, 0 }
  0x82   : > { %1078 = vmatprep.mubr.msk.bf16.mxu0 %vm1418_vm0, %v1417_v0  ;;  %1098 = vmatprep.mubr.msk.bf16.mxu1 %vm1418_vm0, %v1417_v0  ;;  %s1673_s8 = sld [smem:[#allocation3 + %s1664_s24]]  ;;  %s687_s22 = sadd.s32 1, %s1664_s24  ;;  %v1204_v6 = vld [vmem:[%s1657_s5 + $0x50] sm:$0xff]   ;;  %v1205_v9 = vld [vmem:[%s1657_s5 + $0x18] sm:$0xff]   ;;  %v1207_v11 = vld [vmem:[%s1657_s5 + $0x20] sm:$0xff]   ;;  %v1748_v41 = vshrl.u32 %v606_v40, 7 }
  0x83   : > { %s1676_s11 = sld [smem:[#allocation3 + %s687_s22]]  ;;  %1063 = vmatpush3.bf16.msra.mxu0 %v1199_v1  ;;  %1083 = vmatpush3.bf16.msra.mxu1 %v1200_v2  ;;  %v1206_v10 = vld [vmem:[%s1657_s5 + $0x58] sm:$0xff]   ;;  %v1208_v12 = vld [vmem:[%s1657_s5 + $0x60] sm:$0xff]   ;;  %v1209_v14 = vld [vmem:[%s1657_s5 + $0x28] sm:$0xff]   ;;  %s767_s14 = sadd.s32 2, %s1664_s24 }
  0x84   : > { %1064 = vmatprep.subr.bf16.mxu0 %v1417_v0  ;;  %1084 = vmatprep.subr.bf16.mxu1 %v1417_v0  ;;  %v1210_v16 = vld [vmem:[%s1657_s5 + $0x68] sm:$0xff]   ;;  %v1211_v17 = vld [vmem:[%s1657_s5 + $0x30] sm:$0xff]   ;;  %v1213_v19 = vld [vmem:[%s1657_s5 + $0x38] sm:$0xff]   ;;  %s1741_s15 = sld [smem:[#allocation3 + %s767_s14]]  ;;  %v1751_v42 = vsub.s32 0, %v1748_v41  ;;  %v1764_v47 = vadd.s32 8, %v1748_v41 }
  0x85   : > { %v1212_v18 = vld [vmem:[%s1657_s5 + $0x70] sm:$0xff]   ;;  %v280_v21 = vld [vmem:[%s1649_s12 + $0x8] sm:$0xff]  ;;  %v282_v24 = vld [vmem:[%s1649_s12 + $0x18] sm:$0xff] }
  0x86   : > { %v279_v20 = vld [vmem:[%s1649_s12] sm:$0xff]  ;;  %v1214_v22 = vld [vmem:[%s1657_s5 + $0x78] sm:$0xff]   ;;  %v281_v23 = vld [vmem:[%s1649_s12 + $0x10] sm:$0xff] }
  0x87   : > { %1065 = vmatpush3.bf16.msra.mxu0 %v1201_v3  ;;  %1085 = vmatpush3.bf16.msra.mxu1 %v1202_v4  ;;  %v336_v25 = vpack.c.bf16 %v280_v21, %v279_v20  ;;  %v337_v26 = vpack.c.bf16 %v282_v24, %v281_v23  ;;  %v1215_v27 = vld [vmem:[%s1657_s5 + $0x80] sm:$0xff]   ;;  %v1216_v28 = vld [vmem:[%s1657_s5 + $0x88] sm:$0xff]   ;;  %v1217_v29 = vld [vmem:[%s1657_s5 + $0x90] sm:$0xff]  }
  0x88   : > { %p623_p2 = scmp.gt.s32.totalorder %s1673_s8, 1  ;;  %1066 = vmatprep.subr.bf16.mxu0 %v1417_v0  ;;  %1086 = vmatprep.subr.bf16.mxu1 %v1417_v0  ;;  %v1218_v30 = vld [vmem:[%s1657_s5 + $0x98] sm:$0xff]   ;;  %v1219_v31 = vld [vmem:[%s1657_s5 + $0xa0] sm:$0xff]   ;;  %v1220_v32 = vld [vmem:[%s1657_s5 + $0xa8] sm:$0xff]   ;;  %v616_v44 = vstv %s1673_s8 }
  0x89   : > { %p702_p10 = scmp.gt.s32.totalorder %s1676_s11, 1  ;;  %v1221_v33 = vld [vmem:[%s1657_s5 + $0xb0] sm:$0xff]   ;;  %v1222_v34 = vld [vmem:[%s1657_s5 + $0xb8] sm:$0xff]   ;;  %v695_v46 = vstv %s1676_s11  ;;  %vm617_vm1 = vcmp.lt.s32.totalorder %v1748_v41, %v616_v44  ;;  %vm618_vm3 = vcmp.lt.s32.totalorder %v1764_v47, %v616_v44 }
  0x8a   : > { %s624_s16 = scalar_select %p623_p2, %s1673_s8, 1  ;;  %v283_v35 = vld [vmem:[%s1649_s12 + $0x20] sm:$0xff]  ;;  %v284_v36 = vld [vmem:[%s1649_s12 + $0x28] sm:$0xff]  ;;  %vm696_vm2 = vcmp.lt.s32.totalorder %v1748_v41, %v695_v46  ;;  %v1011_v51 = vsel %vm617_vm1, 1.0, %v1417_v0  ;;  %vm697_vm4 = vcmp.lt.s32.totalorder %v1764_v47, %v695_v46  ;;  %v1012_v59 = vsel %vm618_vm3, 1.0, %v1417_v0 }
  0x8b   : > { %s703_s17 = scalar_select %p702_p10, %s1676_s11, 1  ;;  %1067 = vmatpush3.bf16.msra.mxu0 %v1203_v5  ;;  %1087 = vmatpush3.bf16.msra.mxu1 %v1204_v6  ;;  %v338_v37 = vpack.c.bf16 %v284_v36, %v283_v35  ;;  %v1013_v54 = vsel %vm696_vm2, 1.0, %v1417_v0  ;;  %v1014_v63 = vsel %vm697_vm4, 1.0, %v1417_v0 }
  0x8c   : > { %s625_s20 = scvt.s32.f32 %s624_s16  ;;  %1068 = vmatprep.subr.bf16.mxu0 %v1417_v0  ;;  %1088 = vmatprep.subr.bf16.mxu1 %v1417_v0  ;;  %p782_p12 = scmp.gt.s32.totalorder %s1741_s15, 1 }
  0x8d   : > { %s704_s6 = scvt.s32.f32 %s703_s17  ;;  %s1127_s12 = smul.u32 24, %s1643_s1 }
  0x8e   : > { %v626_v7 = vstv %s625_s20  ;;  %s783_s19 = scalar_select %p782_p12, %s1741_s15, 1 }
  0x8f   : > { %1223 = vrcp.f32 %v626_v7  ;;  %v705_v8 = vstv %s704_s6  ;;  %1069 = vmatpush3.bf16.msra.mxu0 %v1205_v9  ;;  %1089 = vmatpush3.bf16.msra.mxu1 %v1206_v10  ;;  %s1753_s21 = scalar_lea.vmem [#allocation9], %s1127_s12  ;;  %s1853_s11 = scalar_lea.vmem [#allocation10], %s1125_s23 }
  0x90   : > { %1225 = vrcp.f32 %v705_v8  ;;  %1070 = vmatprep.subr.bf16.mxu0 %v1417_v0  ;;  %1090 = vmatprep.subr.bf16.mxu1 %v1417_v0  ;;  %s784_s13 = scvt.s32.f32 %s783_s19  ;;  %v1756_v43 = vld [vmem:[%s1753_s21] sm:$0xff]  ;;  %v1760_v45 = vld [vmem:[%s1753_s21 + $0x8] sm:$0xff]  ;;  %s1034_s23 = smul.u32 768, %s1480_s0 }
  0x91   : > { %v613_v48 = vrot.slane %v1756_v43, %v1751_v42  ;;  %v692_v49 = vrot.slane %v1760_v45, %v1751_v42  ;;  %s663_s5 = scalar_select %p623_p2, 1, 0 }
  0x92   : > { %v785_v38 = vstv %s784_s13  ;;  %s742_s22 = scalar_select %p702_p10, 1, 0 }
  0x93   : > { %1071 = vmatpush3.bf16.msra.mxu0 %v1207_v11  ;;  %1091 = vmatpush3.bf16.msra.mxu1 %v1208_v12  ;;  %1227 = vrcp.f32 %v785_v38  ;;  %s664_s16 = scvt.s32.f32 %s663_s5 }
  0x94   : > { %1072 = vmatprep.subr.bf16.mxu0 %v1417_v0  ;;  %1092 = vmatprep.subr.bf16.mxu1 %v1417_v0  ;;  %s743_s17 = scvt.s32.f32 %s742_s22 }
  0x95   : > { %s667_s8 = ssub.f32 1.0, %s664_s16 }
  0x96   : > { %s746_s20 = ssub.f32 1.0, %s743_s17 }
  0x97   : > { %1073 = vmatpush3.bf16.msra.mxu0 %v1209_v14  ;;  %1093 = vmatpush3.bf16.msra.mxu1 %v1210_v16  ;;  %s822_s6 = scalar_select %p782_p12, 1, 0 }
  0x98   : > { %1074 = vmatprep.subr.bf16.mxu0 %v1417_v0  ;;  %1094 = vmatprep.subr.bf16.mxu1 %v1417_v0 }
  0x99   : > { %v1224_v13 = vpop.eup %1223  ;;  %s823_s14 = scvt.s32.f32 %s822_s6 }
  0x9a   : > { %v1226_v15 = vpop.eup %1225  ;;  %1128 = vpush %v1224_v13 }
  0x9b   : > { %1130 = vpush %v1226_v15  ;;  %1075 = vmatpush3.bf16.msra.mxu0 %v1211_v17  ;;  %1095 = vmatpush3.bf16.msra.mxu1 %v1212_v18  ;;  %s826_s19 = ssub.f32 1.0, %s823_s14 }
  0x9c   : > { %1076 = vmatprep.subr.bf16.mxu0 %v1417_v0  ;;  %1096 = vmatprep.subr.bf16.mxu1 %v1417_v0 }
  0x9d   : > { %v1228_v39 = vpop.eup %1227 }
  0x9e   : > { %1132 = vpush %v1228_v39 }
  0x9f   : > { %1077 = vmatpush3.bf16.msra.mxu0 %v1213_v19  ;;  %1097 = vmatpush3.bf16.msra.mxu1 %v1214_v22 }
  0xa0   : > { %1102 = vmatprep.subr.bf16.mxu0 %v1417_v0 }
  0xa2   : > { %1079 = vmatmul.mubr.bf16.vlgmr.msra.gmra.mrb[0].mxu0 %v336_v25  ;;  %1099 = vmatmul.mubr.bf16.vlgmr.msra.gmra.mrb[0].mxu1 %v337_v26 }
  0xa3   : > { %1103 = vmatpush3.bf16.msra.mxu0 %v1215_v27  ;;  %1118 = vmatprep.mubr.msk.bf16.mxu0 %vm1418_vm0, %v1417_v0 }
  0xa4   : > { %1104 = vmatprep.subr.bf16.mxu0 %v1417_v0 }
  0xa7   : > { %1105 = vmatpush3.bf16.msra.mxu0 %v1216_v28 }
  0xa8   : > { %1106 = vmatprep.subr.bf16.mxu0 %v1417_v0 }
  0xab   : > { %1107 = vmatpush3.bf16.msra.mxu0 %v1217_v29 }
  0xac   : > { %1108 = vmatprep.subr.bf16.mxu0 %v1417_v0 }
  0xaf   : > { %1109 = vmatpush3.bf16.msra.mxu0 %v1218_v30 }
  0xb0   : > { %1110 = vmatprep.subr.bf16.mxu0 %v1417_v0 }
  0xb3   : > { %1111 = vmatpush3.bf16.msra.mxu0 %v1219_v31 }
  0xb4   : > { %1112 = vmatprep.subr.bf16.mxu0 %v1417_v0 }
  0xb7   : > { %1113 = vmatpush3.bf16.msra.mxu0 %v1220_v32 }
  0xb8   : > { %1114 = vmatprep.subr.bf16.mxu0 %v1417_v0 }
  0xbb   : > { %1115 = vmatpush3.bf16.msra.mxu0 %v1221_v33  ;;  %v1809_v33 = vld [vmem:[%s1753_s21 + $0x10] sm:$0xff]  ;;  %s1873_s21 = scalar_lea.hbm %s1925_s4, %s1034_s23 }
  0xbc   : > { %1116 = vmatprep.subr.bf16.mxu0 %v1417_v0  ;;  %v772_v40 = vrot.slane %v1809_v33, %v1751_v42 }
  0xbf   : > { %1117 = vmatpush3.bf16.msra.mxu0 %v1222_v34  ;;  %v775_v34 = vstv %s1741_s15  ;;  %s862_s15 = sshll.u32 %s1853_s11, 4  ;;  %s1875_s15 = int_to_ptr.vmem [resolvable:$true] %s862_s15 }
  0xc0   : > { %vm776_vm5 = vcmp.lt.s32.totalorder %v1748_v41, %v775_v34  ;;  %vm777_vm6 = vcmp.lt.s32.totalorder %v1764_v47, %v775_v34  ;;  %s1335_s0 = scalar_lea.vmem %s1875_s15, 768 }
  0xc1   : > { %p1336_p9 = scmp.ne.s32.totalorder %s1875_s15, %s1335_s0 }
  0xc2   : > { %1119 = vmatmul.mubr.bf16.vlgmr.msra.gmra.mrb[4].mxu0 %v338_v37 }
  0xc3   : > { %p1337_p3 = pnand %p1336_p9, %p1939_p1 }
  0xc5   : > { %p1338_p11 = pneg %p1337_p3 }
  0xcb   : > { %s1790_s29 = spop %1128 }
  0xcc   : > { %s1792_s18 = spop %1130  ;;  %v638_v18 = vstv %s1790_s29  ;;  %s848_s29 = scalar_lea.sflag [#allocation6], %s1643_s1 }
  0xcd   : > { %v717_v21 = vstv %s1792_s18  ;;  %s1419_s18 = smov [#allocation10]  }
  0xce   : > { %s1339_s5 = sshll.u32 %s1419_s18, 4  ;;  %s1340_s5 = int_to_ptr.vmem [resolvable:$false] %s1339_s5 }
  0xcf   : > { %s1826_s24 = spop %1132  ;;  %p1342_p13 = scmp.lt.s32.totalorder %s1875_s15, %s1340_s5 }
 0x175   : > { %v421_v50 = vpop.f32.mrb[0].mxu0  ;;  %v510_v53 = vpop.f32.mrb[0].mxu1 }
 0x176   : > { %v1775_v52 = vadd.f32 %v613_v48, %v421_v50  ;;  %v1080_v55 = vpop.f32.mrb[1].mxu0  ;;  %v1778_v56 = vadd.f32 %v692_v49, %v510_v53  ;;  %v1100_v57 = vpop.f32.mrb[1].mxu1  ;;  %v1017_v50 = vsel %vm776_vm5, 1.0, %v1417_v0 }
 0x177   : > { %v424_v58 = vpop.f32.mrb[2].mxu0  ;;  %v513_v62 = vpop.f32.mrb[2].mxu1 }
 0x178   : > { %v629_v60 = vmul.f32 %v1011_v51, %v1775_v52  ;;  %v1782_v61 = vadd.f32 %v613_v48, %v424_v58  ;;  %v1081_v1 = vpop.f32.mrb[3].mxu0  ;;  %v708_v2 = vmul.f32 %v1013_v54, %v1778_v56  ;;  %v1786_v3 = vadd.f32 %v692_v49, %v513_v62  ;;  %v1101_v4 = vpop.f32.mrb[3].mxu1 }
 0x179   : > { %v1018_v58 = vsel %vm777_vm6, 1.0, %v1417_v0 }
 0x17a   : > { %v630_v5 = vmul.f32 %v1012_v59, %v1782_v61  ;;  %v709_v6 = vmul.f32 %v1014_v63, %v1786_v3 }
 0x17c   : > { %v631_v7 = vadd.f32 %v630_v5, %v629_v60  ;;  %v710_v8 = vadd.f32 %v709_v6, %v708_v2 }
 0x17e   : > { %v632_v9 = vrot.slane %v631_v7, 4  ;;  %v711_v10 = vrot.slane %v710_v8, 4 }
 0x180   : > { %v633_v11 = vadd.f32 %v632_v9, %v631_v7  ;;  %v712_v12 = vadd.f32 %v711_v10, %v710_v8 }
 0x182   : > { %v634_v13 = vrot.slane %v633_v11, 2  ;;  %v713_v14 = vrot.slane %v712_v12, 2 }
 0x184   : > { %v635_v15 = vadd.f32 %v634_v13, %v633_v11  ;;  %v714_v16 = vadd.f32 %v713_v14, %v712_v12 }
 0x186   : > { %v636_v17 = vrot.slane %v635_v15, 1  ;;  %v715_v19 = vrot.slane %v714_v16, 1 }
 0x188   : > { %v637_v20 = vadd.f32 %v636_v17, %v635_v15  ;;  %v716_v22 = vadd.f32 %v715_v19, %v714_v16  ;;  %v797_v17 = vstv %s1826_s24  ;;  %s1341_s24 = scalar_lea.vmem %s1340_s5, 1536 }
 0x189   : > { %p1343_p0 = scmp.lt.s32.totalorder %s1341_s24, %s1335_s0 }
 0x18a   : > { %v1796_v23 = vmul.f32 %v638_v18, %v637_v20  ;;  %v1798_v24 = vmul.f32 %v717_v21, %v716_v22 }
 0x18b   : > { %p1344_p7 = por %p1343_p0, %p1342_p13 }
 0x18c   : > { %v640_v25 = vsub.f32 %v1775_v52, %v1796_v23  ;;  %v641_v26 = vsub.f32 %v1782_v61, %v1796_v23  ;;  %v719_v27 = vsub.f32 %v1778_v56, %v1798_v24  ;;  %v720_v28 = vsub.f32 %v1786_v3, %v1798_v24 }
 0x18d   : > { %p1345_p6 = pnand %p1344_p7, %p1338_p11 }
 0x18e   : > { %v642_v29 = vmul.f32 %v1011_v51, %v640_v25  ;;  %v643_v30 = vmul.f32 %v1012_v59, %v641_v26  ;;  %v721_v31 = vmul.f32 %v1013_v54, %v719_v27  ;;  %v722_v32 = vmul.f32 %v1014_v63, %v720_v28 }
 0x18f   : > { %v665_v25 = vstv %s664_s16 }
 0x190   : > { %v644_v35 = vmul.f32 %v642_v29, %v642_v29  ;;  %v645_v36 = vmul.f32 %v643_v30, %v643_v30  ;;  %v723_v37 = vmul.f32 %v721_v31, %v721_v31  ;;  %v724_v38 = vmul.f32 %v722_v32, %v722_v32 }
 0x191   : > { %v744_v30 = vstv %s743_s17  ;;  %v668_v31 = vstv %s667_s8 }
 0x192   : > { %v646_v39 = vadd.f32 %v645_v36, %v644_v35  ;;  %v725_v44 = vadd.f32 %v724_v38, %v723_v37  ;;  %v673_v38 = vsub.s32 1, %v1748_v41 }
 0x194   : > { %v647_v46 = vrot.slane %v646_v39, 4  ;;  %v726_v48 = vrot.slane %v725_v44, 4 }
 0x195   : > { %v599_v49 = vpop.f32.mrb[4].mxu0 }
 0x196   : > { %v648_v51 = vadd.f32 %v647_v46, %v646_v39  ;;  %v1817_v53 = vadd.f32 %v772_v40, %v599_v49  ;;  %v1120_v54 = vpop.f32.mrb[5].mxu0  ;;  %v727_v55 = vadd.f32 %v726_v48, %v725_v44  ;;  %v747_v39 = vstv %s746_s20 }
 0x197   : > { %v602_v57 = vpop.f32.mrb[6].mxu0 }
 0x198   : > { %v649_v59 = vrot.slane %v648_v51, 2  ;;  %v788_v42 = vmul.f32 %v1017_v50, %v1817_v53  ;;  %v1821_v60 = vadd.f32 %v772_v40, %v602_v57  ;;  %v1121_v62 = vpop.f32.mrb[7].mxu0  ;;  %v728_v47 = vrot.slane %v727_v55, 2 }
 0x19a   : > { %v650_v63 = vadd.f32 %v649_v59, %v648_v51  ;;  %v789_v1 = vmul.f32 %v1018_v58, %v1821_v60  ;;  %v729_v2 = vadd.f32 %v728_v47, %v727_v55 }
 0x19c   : > { %v651_v4 = vrot.slane %v650_v63, 1  ;;  %v790_v5 = vadd.f32 %v789_v1, %v788_v42  ;;  %v730_v6 = vrot.slane %v729_v2, 1 }
 0x19e   : > { %v652_v7 = vadd.f32 %v651_v4, %v650_v63  ;;  %v791_v8 = vrot.slane %v790_v5, 4  ;;  %v731_v9 = vadd.f32 %v730_v6, %v729_v2 }
 0x1a0   : > { %v653_v0 = vmul.f32 %v652_v7, %v638_v18  ;;  %v792_v10 = vadd.f32 %v791_v8, %v790_v5  ;;  %v732_v11 = vmul.f32 %v731_v9, %v717_v21 }
 0x1a2   : > { %v654_v12 = vadd.f32 1e-05, %v653_v0  ;;  %v793_v13 = vrot.slane %v792_v10, 2  ;;  %v733_v14 = vadd.f32 1e-05, %v732_v11 }
 0x1a4   : > { %1229 = vrsqrt.f32 %v654_v12  ;;  %v794_v15 = vadd.f32 %v793_v13, %v792_v10  ;;  %v824_v13 = vstv %s823_s14 }
 0x1a5   : > { %1231 = vrsqrt.f32 %v733_v14 }
 0x1a6   : > { %v795_v16 = vrot.slane %v794_v15, 1 }
 0x1a8   : > { %v796_v18 = vadd.f32 %v795_v16, %v794_v15  ;;  %v827_v15 = vstv %s826_s19 }
 0x1aa   : > { %v1833_v19 = vmul.f32 %v797_v17, %v796_v18 }
 0x1ac   : > { %v799_v20 = vsub.f32 %v1817_v53, %v1833_v19  ;;  %v800_v21 = vsub.f32 %v1821_v60, %v1833_v19 }
 0x1ae   : > { %v1230_v22 = vpop.eup %1229  ;;  %v801_v26 = vmul.f32 %v1017_v50, %v799_v20  ;;  %v802_v27 = vmul.f32 %v1018_v58, %v800_v21  ;;  %v679_v58 = vsub.s32 2, %v1748_v41 }
 0x1af   : > { %v1232_v28 = vpop.eup %1231  ;;  %v656_v29 = vmul.f32 %v1230_v22, %v1756_v43 }
 0x1b0   : > { %v735_v32 = vmul.f32 %v1232_v28, %v1760_v45  ;;  %v803_v34 = vmul.f32 %v801_v26, %v801_v26  ;;  %v804_v35 = vmul.f32 %v802_v27, %v802_v27 }
 0x1b1   : > { %v657_v36 = vmul.f32 %v656_v29, %v1796_v23  ;;  %v666_v37 = vmul.f32 %v665_v25, %v656_v29 }
 0x1b2   : > { %v736_v40 = vmul.f32 %v735_v32, %v1798_v24  ;;  %v745_v44 = vmul.f32 %v744_v30, %v735_v32  ;;  %v805_v46 = vadd.f32 %v804_v35, %v803_v34 }
 0x1b3   : > { %v659_v48 = vrot.slane %v657_v36, 7  ;;  %v669_v49 = vadd.f32 %v668_v31, %v666_v37 }
 0x1b4   : > { %v738_v50 = vrot.slane %v736_v40, 7  ;;  %v748_v51 = vadd.f32 %v747_v39, %v745_v44  ;;  %v806_v54 = vrot.slane %v805_v46, 4 }
 0x1b5   : > { %v661_v55 = vsub.f32 %v1756_v43, %v659_v48  ;;  %v674_v57 = vrot.slane %v669_v49, %v673_v38 }
 0x1b6   : > { %v740_v23 = vsub.f32 %v1760_v45, %v738_v50  ;;  %v753_v59 = vrot.slane %v748_v51, %v673_v38  ;;  %v807_v42 = vadd.f32 %v806_v54, %v805_v46 }
 0x1b7   : > { %v670_v62 = vmul.f32 %v665_v25, %v661_v55  ;;  %v675_v47 = vmul.f32 %v674_v57, %v1775_v52  ;;  %v676_v24 = vmul.f32 %v674_v57, %v1782_v61 }
 0x1b8   : > { %v749_v63 = vmul.f32 %v744_v30, %v740_v23  ;;  %v754_v1 = vmul.f32 %v753_v59, %v1778_v56  ;;  %v755_v2 = vmul.f32 %v753_v59, %v1786_v3  ;;  %v808_v4 = vrot.slane %v807_v42, 2 }
 0x1b9   : > { %v680_v43 = vrot.slane %v670_v62, %v679_v58 }
 0x1ba   : > { %v759_v5 = vrot.slane %v749_v63, %v679_v58  ;;  %v809_v6 = vadd.f32 %v808_v4, %v807_v42 }
 0x1bb   : > { %v681_v41 = vadd.f32 %v680_v43, %v675_v47  ;;  %v682_v45 = vadd.f32 %v680_v43, %v676_v24 }
 0x1bc   : > { %v760_v7 = vadd.f32 %v759_v5, %v754_v1  ;;  %v761_v8 = vadd.f32 %v759_v5, %v755_v2  ;;  %v810_v9 = vrot.slane %v809_v6, 1 }
 0x1bd   : > { %v683_v52 = vmax.f32 %v681_v41, 0.0  ;;  %v684_v0 = vmax.f32 %v682_v45, 0.0 }
 0x1be   : > { %v762_v61 = vmax.f32 %v760_v7, 0.0  ;;  %v763_v10 = vmax.f32 %v761_v8, 0.0  ;;  %v811_v11 = vadd.f32 %v810_v9, %v809_v6 }
 0x1bf   : > { %685 = vst [vmem:[%s1853_s11] sm:$0xff] %v683_v52  ;;  %686 = vst [vmem:[%s1853_s11 + $0x8] sm:$0xff] %v684_v0 }
 0x1c0   : > { %1015 = vst [vmem:[%s1853_s11 + $0x10] sm:$0xff] %v762_v61  ;;  %1016 = vst [vmem:[%s1853_s11 + $0x18] sm:$0xff] %v763_v10  ;;  %v812_v56 = vmul.f32 %v811_v11, %v797_v17 }
 0x1c2   : > { %v813_v3 = vadd.f32 1e-05, %v812_v56 }
 0x1c4   : > { %1233 = vrsqrt.f32 %v813_v3 }
 0x1ce   : > { %v1234_v12 = vpop.eup %1233 }
 0x1cf   : > { %v815_v14 = vmul.f32 %v1234_v12, %v1809_v33 }
 0x1d1   : > { %v816_v16 = vmul.f32 %v815_v14, %v1833_v19  ;;  %v825_v18 = vmul.f32 %v824_v13, %v815_v14 }
 0x1d3   : > { %v818_v20 = vrot.slane %v816_v16, 7  ;;  %v828_v21 = vadd.f32 %v827_v15, %v825_v18 }
 0x1d5   : > { %v820_v17 = vsub.f32 %v1809_v33, %v818_v20  ;;  %v833_v22 = vrot.slane %v828_v21, %v673_v38 }
 0x1d7   : > { %v829_v25 = vmul.f32 %v824_v13, %v820_v17  ;;  %v834_v26 = vmul.f32 %v833_v22, %v1817_v53  ;;  %v835_v27 = vmul.f32 %v833_v22, %v1821_v60 }
 0x1d9   : > { %v839_v28 = vrot.slane %v829_v25, %v679_v58 }
 0x1db   : > { %v840_v29 = vadd.f32 %v839_v28, %v834_v26  ;;  %v841_v19 = vadd.f32 %v839_v28, %v835_v27 }
 0x1dd   : > { %v842_v33 = vmax.f32 %v840_v29, 0.0  ;;  %v843_v53 = vmax.f32 %v841_v19, 0.0 }
 0x1df   : > { %1019 = vst [vmem:[%s1853_s11 + $0x20] sm:$0xff] %v842_v33  ;;  %1020 = vst [vmem:[%s1853_s11 + $0x28] sm:$0xff] %v843_v53 }
 0x1e0   : > { %1348 = shalt.err (!%p1345_p6)
}
 0x1e1   : > { %s1349_s22 = scalar_lea.hbm %s1873_s21, 768  ;;  %s1353_s8 = scalar_lea.hbm %s1925_s4, 1536 }
 0x1e2   : > { %p1350_p8 = scmp.ne.s32.totalorder %s1873_s21, %s1349_s22  ;;  %p1354_p2 = scmp.lt.u32.totalorder %s1873_s21, %s1925_s4 }
 0x1e3   : > { %p1355_p10 = scmp.lt.u32.totalorder %s1353_s8, %s1349_s22  ;;  %p1357_p9 = scmp.lt.u32.totalorder %s1349_s22, %s1873_s21 }
 0x1e4   : > { %p1351_p5 = pnand %p1350_p8, %p1939_p1 }
 0x1e5   : > { %p1356_p12 = por %p1355_p10, %p1354_p2 }
 0x1e6   : > { %p1352_p4 = pneg %p1351_p5 }
 0x1e7   : > { %p1358_p3 = por %p1357_p9, %p1356_p12 }
 0x1e9   : > { %p1359_p11 = pnand %p1358_p3, %p1352_p4 }
 0x1eb   : > { %1362 = shalt.err (!%p1359_p11)
}
 0x1ec   : > { %s1420_s6 = smov 128   ;;  %s1421_s14 = smov 8  }
 0x1ed   : > { %1140 = dma.vmem_to_hbm [thread:$0]  (%p1939_p1), %s1875_s15, 768, %s1873_s21, %s848_s29, %s1420_s6, %s1420_s6, %s1421_s14  }
 0x1ee PF: > { %s877_s19 = sand.u32 1, %s1395_s25   ;;  %p1940_p13 = scmp.ne.s32.totalorder %s1931_s10, 0 }
 0x1ef   : > { %p1941_p0 = scmp.ge.s32.totalorder %s1407_s28, 2  ;;  %s878_s23 = scalar_lea.sflag [#allocation6], %s877_s19 }
 0x1f1   : > { %p1153_p7 = pnand %p1941_p0, %p1940_p13 }
 0x1f3   : > { %1390 = dma.done.wait (!%p1153_p7), %s878_s23, 768  }
 0x1f4   : > { %1392 = vsyncadd (!%p1153_p7), %s878_s23, 4294966528  ;;  %p24_p6 = scmp.ge.s32.totalorder %s1484_s30, 4   ;;  %s1942_s25 = smov %s1399_s26 }
 0x1f5   : > { %s1943_s26 = smov %s1403_s27  ;;  %s1944_s27 = smov %s1496_s7 }
 0x1f6   : > { %s1945_s28 = smov %s1484_s30  ;;  %26 = sbr.rel (!%p24_p6) target bundleno = 19 (0x13), region = 103 }
 0x1fd   :  { %883 = vsyncpa [#allocation5], 1 }
 0x1fe   :  { %885 = vsyncpa [#allocation5 + $0x1], 1 }
 0x1ff   :  { %886 = vsyncpa [#allocation8], 1 }
 0x200   :  { %888 = vsyncpa [#allocation8 + $0x1], 1 }
 0x201   :  { %889 = vsyncpa [#allocation6], 1 }
 0x202   :  { %891 = vsyncpa [#allocation6 + $0x1], 1 }

</bundles_post_ra>
